<compile_context>
chip_gen: v7x
topology: tpu7x:2x2x1
jax: 0.10.0
libtpu: 0.0.40
codegen_flags: <defaults>
</compile_context>

<pallas_src>
import functools

import jax
import jax.numpy as jnp
from jax.experimental import pallas as pl
from jax.experimental.pallas import tpu as pltpu


# ----------------------------------------------------------------------------
# Fused Pallas kernel (gridded over D)
# ----------------------------------------------------------------------------
def _novel_fused_kernel(w_ref, x_ref, coef_ref, pstate_ref, fstate_ref,
                        w1_ref, b1_ref, w2_ref, b2_ref,
                        proto_out_ref, feat_out_ref, h_acc):
    """Per D-tile: prototype reduction + EMA + partial fc1; finalize at end.

    w:      [KP, N]       bf16 normalized per-class proposal weights
    x:      [N, TILE_D]   bf16 flattened box-feature tile
    coef:   [KP, 8]       f32  blend coeffs (cols 0..3 = pa, pb, fa, fb)
    pstate: [KP, TILE_D]  f32  stored prototype tile (aliased with proto_out)
    fstate: [KP, FC]      f32  stored prototype features (aliased w/ feat_out)
    w1/b1/w2/b2:          box head FC->ReLU->FC->ReLU (weights bf16, bias f32)
    h_acc:  [KP, FC]      f32  fc1 accumulator scratch (persists across grid)
    """
    d = pl.program_id(0)

    @pl.when(d == 0)
    def _():
        h_acc[...] = jnp.zeros_like(h_acc)

    # 1) IoU-weighted class means for this D tile (MXU), fused with proto EMA.
    proto = jnp.dot(w_ref[...], x_ref[...], preferred_element_type=jnp.float32)
    pa = coef_ref[:, 0:1]
    pb = coef_ref[:, 1:2]
    fused_p = pa * proto + pb * pstate_ref[...]          # [KP, TILE_D] f32
    proto_out_ref[...] = fused_p

    # 2) Partial fc1 matmul over this D tile, f32 accumulation.
    h_acc[...] += jnp.dot(fused_p.astype(jnp.bfloat16), w1_ref[...],
                          preferred_element_type=jnp.float32)

    # 3) Finalize on the last D tile: bias+ReLU, fc2+ReLU, feature EMA.
    @pl.when(d == pl.num_programs(0) - 1)
    def _():
        h = jnp.maximum(h_acc[...] + b1_ref[...], 0.0)
        f = jnp.dot(h.astype(jnp.bfloat16), w2_ref[...],
                    preferred_element_type=jnp.float32)
        f = jnp.maximum(f + b2_ref[...], 0.0)
        fa = coef_ref[:, 2:3]
        fb = coef_ref[:, 3:4]
        feat_out_ref[...] = fa * f + fb * fstate_ref[...]


# ----------------------------------------------------------------------------
# Plain-JAX glue: per-class weight matrix (replaces python-side masking /
# sorting / dict grouping of the torch forward).
# ----------------------------------------------------------------------------
def build_weight_matrix(gt_classes, ious, *, num_classes, bg_clsid,
                        bg_bottom_k, iou_thresh, kp):
    del num_classes  # padded rows never match any gt class -> stay invalid.
    n = gt_classes.shape[0]
    ious = ious.astype(jnp.float32)
    cls_ids = jnp.arange(kp)[:, None]                           # [KP, 1]

    # Foreground rows: iou-weighted mean over {gt == k and iou > thresh}.
    fg_mask = (gt_classes[None, :] == cls_ids) & (ious[None, :] > iou_thresh)
    fg_mask = fg_mask & (cls_ids != bg_clsid)
    w_fg = fg_mask.astype(jnp.float32) * ious[None, :]          # [KP, N]
    denom = jnp.sum(w_fg, axis=1, keepdims=True)
    w_fg = jnp.where(denom > 0, w_fg / jnp.maximum(denom, 1e-12), 0.0)
    batch_valid = denom[:, 0] > 0   # padded class ids stay False

    # Background row: equal-weight mean over the bottom-k lowest-IoU bg boxes
    # (lax.top_k on negated IoUs instead of a double argsort).
    bg_mask = gt_classes == bg_clsid
    num_bg = jnp.sum(bg_mask.astype(jnp.int32))
    k_sel = min(int(bg_bottom_k), n)
    neg_iou = jnp.where(bg_mask, -ious, -jnp.inf)
    top_vals, top_idx = jax.lax.top_k(neg_iou, k_sel)
    sel_valid = top_vals > -jnp.inf                              # real bg boxes
    retain = jnp.sum(sel_valid.astype(jnp.int32))                # min(k, num_bg)
    w_bg = jnp.zeros((n,), jnp.float32).at[top_idx].add(
        sel_valid.astype(jnp.float32))
    w_bg = w_bg / jnp.maximum(retain, 1).astype(jnp.float32)

    w = w_fg.at[bg_clsid].set(w_bg)
    # TODO(synk): torch yields NaN prototypes when there are zero bg proposals;
    # here that class is simply marked invalid instead (behavioral difference).
    batch_valid = batch_valid.at[bg_clsid].set(num_bg > 0)
    return w, batch_valid


def _blend_coeffs(batch_valid, state_valid, alpha):
    """new_state = a*new + b*old with (a,b) = (alpha,1-alpha)/(1,0)/(0,1)."""
    both = batch_valid & state_valid
    a = jnp.where(both, alpha, jnp.where(batch_valid, 1.0, 0.0))
    b = jnp.where(both, 1.0 - alpha, jnp.where(batch_valid, 0.0, 1.0))
    return a.astype(jnp.float32), b.astype(jnp.float32)


# ----------------------------------------------------------------------------
# Tiling / VMEM budgeting (per TPU generation)
# ----------------------------------------------------------------------------
def _pick_tile_d(d, target=None):
    """Largest multiple of 128 dividing d and <= target (fallback: full d)."""
    if target is None:
        try:  # smaller tiles on v7x (64 MiB VMEM), larger on v5e/v6e (128 MiB)
            vmem = pltpu.get_tpu_info().vmem_capacity_bytes
        except Exception:
            vmem = 128 << 20
        target = 2048 if vmem <= (64 << 20) else 4096
    target = max(128, min(int(target), d))
    best = None
    t = 128
    while t <= target:
        if d % t == 0:
            best = t
        t += 128
    return best if best is not None else d


def _vmem_budget_bytes(n, kp, tile_d, fc):
    bf16, f32 = 2, 4
    per_buf = (kp * n * bf16            # w
               + n * tile_d * bf16      # x tile
               + kp * 8 * f32           # coef
               + kp * tile_d * f32      # pstate tile
               + kp * fc * f32          # fstate
               + tile_d * fc * bf16     # fc1 weight tile
               + 2 * fc * f32           # b1, b2
               + fc * fc * bf16         # fc2 weight
               + kp * tile_d * f32      # proto_out tile
               + kp * fc * f32)         # feat_out
    scratch = kp * fc * f32
    est = 2 * per_buf + scratch + (4 << 20)   # double-buffering + slack
    return int(min(max(est, 32 << 20), 100 << 20))


# ----------------------------------------------------------------------------
# Forward wrapper (functional NovelModule.forward: returns new state).
# ----------------------------------------------------------------------------
@functools.partial(
    jax.jit,
    static_argnames=("num_classes", "bg_clsid", "bg_bottom_k", "iou_thresh",
                     "alpha", "tile_d"),
    donate_argnums=(3, 5),  # proto_state, feat_state updated in place
)
def novel_module_forward(box_features, gt_classes, ious,
                         proto_state, proto_valid, feat_state, feat_valid,
                         fc1_w, fc1_b, fc2_w, fc2_b,
                         *, num_classes, bg_clsid, bg_bottom_k, iou_thresh,
                         alpha, tile_d=None):
    n = box_features.shape[0]
    kp, d = proto_state.shape
    fc = feat_state.shape[1]

    # Dominant HBM stream stays bf16 (no f32 upcast).
    x = box_features.reshape(n, -1)
    if x.dtype != jnp.bfloat16:
        x = x.astype(jnp.bfloat16)

    w_f32, batch_valid = build_weight_matrix(
        gt_classes, ious, num_classes=num_classes, bg_clsid=bg_clsid,
        bg_bottom_k=bg_bottom_k, iou_thresh=iou_thresh, kp=kp)
    w = w_f32.astype(jnp.bfloat16)

    # Fold the four blend-coefficient vectors into one [KP, 8] operand.
    pa, pb = _blend_coeffs(batch_valid, proto_valid, alpha)
    fa, fb = _blend_coeffs(batch_valid, feat_valid, alpha)
    coef = jnp.pad(jnp.stack([pa, pb, fa, fb], axis=1), ((0, 0), (0, 4)))

    # FC weights are expected pre-cast to bf16 at load time; these are no-ops
    # then (kept only as a safety net for f32 callers).
    w1 = fc1_w if fc1_w.dtype == jnp.bfloat16 else fc1_w.astype(jnp.bfloat16)
    w2 = fc2_w if fc2_w.dtype == jnp.bfloat16 else fc2_w.astype(jnp.bfloat16)
    b1 = fc1_b.astype(jnp.float32).reshape(1, fc)
    b2 = fc2_b.astype(jnp.float32).reshape(1, fc)

    td = _pick_tile_d(d, tile_d)
    grid_d = d // td

    fused_proto, fused_feat = pl.pallas_call(
        _novel_fused_kernel,
        out_shape=(jax.ShapeDtypeStruct((kp, d), jnp.float32),
                   jax.ShapeDtypeStruct((kp, fc), jnp.float32)),
        grid_spec=pltpu.PrefetchScalarGridSpec(
            num_scalar_prefetch=0,
            grid=(grid_d,),
            in_specs=[
                pl.BlockSpec((kp, n), lambda i: (0, 0)),      # w
                pl.BlockSpec((n, td), lambda i: (0, i)),      # x tile
                pl.BlockSpec((kp, 8), lambda i: (0, 0)),      # coef
                pl.BlockSpec((kp, td), lambda i: (0, i)),     # pstate tile
                pl.BlockSpec((kp, fc), lambda i: (0, 0)),     # fstate
                pl.BlockSpec((td, fc), lambda i: (i, 0)),     # fc1 weight tile
                pl.BlockSpec((1, fc), lambda i: (0, 0)),      # b1
                pl.BlockSpec((fc, fc), lambda i: (0, 0)),     # fc2 weight
                pl.BlockSpec((1, fc), lambda i: (0, 0)),      # b2
            ],
            out_specs=[
                pl.BlockSpec((kp, td), lambda i: (0, i)),     # proto_out tile
                pl.BlockSpec((kp, fc), lambda i: (0, 0)),     # feat_out
            ],
            scratch_shapes=[pltpu.VMEM((kp, fc), jnp.float32)]),
        # In-place EMA (P8): input 3 (proto_state) -> output 0,
        #                    input 4 (feat_state)  -> output 1.
        input_output_aliases={3: 0, 4: 1},
        compiler_params=pltpu.CompilerParams(
            dimension_semantics=("arbitrary",),   # D carries the fc1 accumulator
            vmem_limit_bytes=_vmem_budget_bytes(n, kp, td, fc)),
    )(w, x, coef, proto_state, feat_state, w1, b1, w2, b2)

    new_proto_valid = proto_valid | batch_valid
    new_feat_valid = feat_valid | batch_valid
    return fused_proto, new_proto_valid, fused_feat, new_feat_valid


# ----------------------------------------------------------------------------
if __name__ == "__main__":
    key = jax.random.PRNGKey(0)

    # Config (cfg.MODEL.ROI_HEADS.*): 4 foreground classes + 1 background.
    num_classes = 5
    bg_clsid = num_classes - 1
    bg_bottom_k = 3
    iou_thresh = 0.5
    alpha = 0.9                       # PROTOTYPES_FUSE_ALPHA

    in_channel, pooler_resolution = 4, 16
    d = in_channel * pooler_resolution * pooler_resolution       # 1024
    fc_dim = 128                      # box head FC width (2 FCs, no convs)
    n_props = 16                      # total proposals across images
    kp = 8                            # num_classes padded for nice tiling

    k1, k2, k3, k4, k5 = jax.random.split(key, 5)
    box_features = jax.random.normal(
        k1, (n_props, in_channel, pooler_resolution, pooler_resolution),
        dtype=jnp.float32).astype(jnp.bfloat16)
    gt_classes = jax.random.randint(k2, (n_props,), 0, num_classes)
    ious = jax.random.uniform(k3, (n_props,), dtype=jnp.float32)

    # Box-head params (feature_extractor: FC->ReLU->FC->ReLU), weights
    # pre-cast to bf16 ONCE at load time so the forward never re-casts them.
    fc1_w = (jax.random.normal(k4, (d, fc_dim), jnp.float32) * 0.02
             ).astype(jnp.bfloat16)
    fc1_b = jnp.zeros((1, fc_dim), jnp.float32)
    fc2_w = (jax.random.normal(k5, (fc_dim, fc_dim), jnp.float32) * 0.02
             ).astype(jnp.bfloat16)
    fc2_b = jnp.zeros((1, fc_dim), jnp.float32)

    # Fresh module state (all prototypes / prototype features are None).
    proto_state = jnp.zeros((kp, d), jnp.float32)
    proto_valid = jnp.zeros((kp,), dtype=bool)
    feat_state = jnp.zeros((kp, fc_dim), jnp.float32)
    feat_valid = jnp.zeros((kp,), dtype=bool)

    outs = novel_module_forward(
        box_features, gt_classes, ious,
        proto_state, proto_valid, feat_state, feat_valid,
        fc1_w, fc1_b, fc2_w, fc2_b,
        num_classes=num_classes, bg_clsid=bg_clsid,
        bg_bottom_k=bg_bottom_k, iou_thresh=iou_thresh, alpha=alpha,
        tile_d=512)    # force a 2-step D pipeline at toy size; None = auto
    outs = jax.block_until_ready(outs)

    new_proto, new_pvalid, new_feat, new_fvalid = outs
    assert new_proto.shape == (kp, d)
    assert new_feat.shape == (kp, fc_dim)
    assert bool(jnp.all(jnp.isfinite(new_proto)))
    assert bool(jnp.all(jnp.isfinite(new_feat)))
    print("KERNEL_OK")
</pallas_src>

<mosaic_0001>
module attributes {stable_mosaic.version = 11 : i64} {
  func.func @_novel_fused_kernel(%arg0: i32, %arg1: memref<8x16xbf16, #tpu.memory_space<vmem>>, %arg2: memref<16x512xbf16, #tpu.memory_space<vmem>>, %arg3: memref<8x8xf32, #tpu.memory_space<vmem>>, %arg4: memref<8x512xf32, #tpu.memory_space<vmem>>, %arg5: memref<8x128xf32, #tpu.memory_space<vmem>>, %arg6: memref<512x128xbf16, #tpu.memory_space<vmem>>, %arg7: memref<1x128xf32, #tpu.memory_space<vmem>>, %arg8: memref<128x128xbf16, #tpu.memory_space<vmem>>, %arg9: memref<1x128xf32, #tpu.memory_space<vmem>>, %arg10: memref<8x512xf32, #tpu.memory_space<vmem>>, %arg11: memref<8x128xf32, #tpu.memory_space<vmem>>, %arg12: memref<8x128xf32, #tpu.memory_space<vmem>>) attributes {dimension_semantics = [#tpu.dimension_semantics<arbitrary>], iteration_bounds = array<i64: 2>, scalar_prefetch = 0 : i64, scratch_operands = 1 : i64, tpu.core_type = #tpu.core_type<tc>, window_params = [{pipeline_mode = #tpu.pipeline_mode<synchronous>, transform_indices = @transform_0, window_bounds = array<i64: 8, 16>}, {transform_indices = @transform_1, window_bounds = array<i64: 16, 512>}, {pipeline_mode = #tpu.pipeline_mode<synchronous>, transform_indices = @transform_2, window_bounds = array<i64: 8, 8>}, {transform_indices = @transform_3, window_bounds = array<i64: 8, 512>}, {pipeline_mode = #tpu.pipeline_mode<synchronous>, transform_indices = @transform_4, window_bounds = array<i64: 8, 128>}, {transform_indices = @transform_5, window_bounds = array<i64: 512, 128>}, {pipeline_mode = #tpu.pipeline_mode<synchronous>, transform_indices = @transform_6, window_bounds = array<i64: 1, 128>}, {pipeline_mode = #tpu.pipeline_mode<synchronous>, transform_indices = @transform_7, window_bounds = array<i64: 128, 128>}, {pipeline_mode = #tpu.pipeline_mode<synchronous>, transform_indices = @transform_8, window_bounds = array<i64: 1, 128>}, {transform_indices = @transform_9, window_bounds = array<i64: 8, 512>}, {pipeline_mode = #tpu.pipeline_mode<synchronous>, transform_indices = @transform_10, window_bounds = array<i64: 8, 128>}]} {
    %c0_i32 = arith.constant 0 : i32
    %0 = arith.cmpi eq, %arg0, %c0_i32 : i32
    %1 = arith.extui %0 : i1 to i32
    %c0_i32_0 = arith.constant 0 : i32
    %2 = arith.cmpi ne, %1, %c0_i32_0 : i32
    scf.if %2 {
      %cst_19 = arith.constant 0.000000e+00 : f32
      %24 = vector.broadcast %cst_19 : f32 to vector<8x128xf32>
      %c0_20 = arith.constant 0 : index
      %c0_21 = arith.constant 0 : index
      %25 = vector.load %arg12[%c0_20, %c0_21] : memref<8x128xf32, #tpu.memory_space<vmem>>, vector<8x128xf32>
      tpu.vector_store %arg12[%c0_20, %c0_21], %24 {strides = array<i32>} : memref<8x128xf32, #tpu.memory_space<vmem>>, vector<8x128xf32>,
    } else {
    }
    %c0 = arith.constant 0 : index
    %c0_1 = arith.constant 0 : index
    %3 = vector.load %arg1[%c0, %c0_1] : memref<8x16xbf16, #tpu.memory_space<vmem>>, vector<8x16xbf16>
    %c0_2 = arith.constant 0 : index
    %c0_3 = arith.constant 0 : index
    %4 = vector.load %arg2[%c0_2, %c0_3] : memref<16x512xbf16, #tpu.memory_space<vmem>>, vector<16x512xbf16>
    %cst = arith.constant dense<0.000000e+00> : vector<8x512xf32>
    %5 = tpu.matmul %3, %4, %cst {dimension_numbers = #tpu.dot_dimension_numbers<[1], [0], [0], [1], [0, 0, 1, 1], [], []>} : vector<8x16xbf16>, vector<16x512xbf16>, vector<8x512xf32> -> vector<8x512xf32>
    %c0_4 = arith.constant 0 : index
    %c0_5 = arith.constant 0 : index
    %6 = vector.load %arg3[%c0_4, %c0_5] : memref<8x8xf32, #tpu.memory_space<vmem>>, vector<8x1xf32>
    %c0_6 = arith.constant 0 : index
    %c1 = arith.constant 1 : index
    %7 = vector.load %arg3[%c0_6, %c1] : memref<8x8xf32, #tpu.memory_space<vmem>>, vector<8x1xf32>
    %8 = vector.broadcast %6 : vector<8x1xf32> to vector<8x512xf32>
    %9 = arith.mulf %8, %5 : vector<8x512xf32>
    %c0_7 = arith.constant 0 : index
    %c0_8 = arith.constant 0 : index
    %10 = vector.load %arg4[%c0_7, %c0_8] : memref<8x512xf32, #tpu.memory_space<vmem>>, vector<8x512xf32>
    %11 = vector.broadcast %7 : vector<8x1xf32> to vector<8x512xf32>
    %12 = arith.mulf %11, %10 : vector<8x512xf32>
    %13 = arith.addf %9, %12 : vector<8x512xf32>
    %c0_9 = arith.constant 0 : index
    %c0_10 = arith.constant 0 : index
    %14 = vector.load %arg10[%c0_9, %c0_10] : memref<8x512xf32, #tpu.memory_space<vmem>>, vector<8x512xf32>
    tpu.vector_store %arg10[%c0_9, %c0_10], %13 {strides = array<i32>} : memref<8x512xf32, #tpu.memory_space<vmem>>, vector<8x512xf32>,
    %c0_11 = arith.constant 0 : index
    %c0_12 = arith.constant 0 : index
    %15 = vector.load %arg12[%c0_11, %c0_12] : memref<8x128xf32, #tpu.memory_space<vmem>>, vector<8x128xf32>
    %16 = arith.truncf %13 : vector<8x512xf32> to vector<8x512xbf16>
    %c0_13 = arith.constant 0 : index
    %c0_14 = arith.constant 0 : index
    %17 = vector.load %arg6[%c0_13, %c0_14] : memref<512x128xbf16, #tpu.memory_space<vmem>>, vector<512x128xbf16>
    %cst_15 = arith.constant dense<0.000000e+00> : vector<8x128xf32>
    %18 = tpu.matmul %16, %17, %cst_15 {dimension_numbers = #tpu.dot_dimension_numbers<[1], [0], [0], [1], [0, 0, 1, 1], [], []>} : vector<8x512xbf16>, vector<512x128xbf16>, vector<8x128xf32> -> vector<8x128xf32>
    %19 = arith.addf %15, %18 : vector<8x128xf32>
    %c0_16 = arith.constant 0 : index
    %c0_17 = arith.constant 0 : index
    %20 = vector.load %arg12[%c0_16, %c0_17] : memref<8x128xf32, #tpu.memory_space<vmem>>, vector<8x128xf32>
    tpu.vector_store %arg12[%c0_16, %c0_17], %19 {strides = array<i32>} : memref<8x128xf32, #tpu.memory_space<vmem>>, vector<8x128xf32>,
    %c1_i32 = arith.constant 1 : i32
    %21 = arith.cmpi eq, %arg0, %c1_i32 : i32
    %22 = arith.extui %21 : i1 to i32
    %c0_i32_18 = arith.constant 0 : i32
    %23 = arith.cmpi ne, %22, %c0_i32_18 : i32
    scf.if %23 {
      %c0_19 = arith.constant 0 : index
      %c0_20 = arith.constant 0 : index
      %24 = vector.load %arg12[%c0_19, %c0_20] : memref<8x128xf32, #tpu.memory_space<vmem>>, vector<8x128xf32>
      %c0_21 = arith.constant 0 : index
      %c0_22 = arith.constant 0 : index
      %25 = vector.load %arg7[%c0_21, %c0_22] : memref<1x128xf32, #tpu.memory_space<vmem>>, vector<1x128xf32>
      %26 = vector.broadcast %25 : vector<1x128xf32> to vector<8x128xf32>
      %27 = arith.addf %24, %26 : vector<8x128xf32>
      %cst_23 = arith.constant 0.000000e+00 : f32
      %28 = vector.broadcast %cst_23 : f32 to vector<8x128xf32>
      %29 = arith.maximumf %27, %28 : vector<8x128xf32>
      %30 = arith.truncf %29 : vector<8x128xf32> to vector<8x128xbf16>
      %c0_24 = arith.constant 0 : index
      %c0_25 = arith.constant 0 : index
      %31 = vector.load %arg8[%c0_24, %c0_25] : memref<128x128xbf16, #tpu.memory_space<vmem>>, vector<128x128xbf16>
      %cst_26 = arith.constant dense<0.000000e+00> : vector<8x128xf32>
      %32 = tpu.matmul %30, %31, %cst_26 {dimension_numbers = #tpu.dot_dimension_numbers<[1], [0], [0], [1], [0, 0, 1, 1], [], []>} : vector<8x128xbf16>, vector<128x128xbf16>, vector<8x128xf32> -> vector<8x128xf32>
      %c0_27 = arith.constant 0 : index
      %c0_28 = arith.constant 0 : index
      %33 = vector.load %arg9[%c0_27, %c0_28] : memref<1x128xf32, #tpu.memory_space<vmem>>, vector<1x128xf32>
      %34 = vector.broadcast %33 : vector<1x128xf32> to vector<8x128xf32>
      %35 = arith.addf %32, %34 : vector<8x128xf32>
      %cst_29 = arith.constant 0.000000e+00 : f32
      %36 = vector.broadcast %cst_29 : f32 to vector<8x128xf32>
      %37 = arith.maximumf %35, %36 : vector<8x128xf32>
      %c0_30 = arith.constant 0 : index
      %c2 = arith.constant 2 : index
      %38 = vector.load %arg3[%c0_30, %c2] : memref<8x8xf32, #tpu.memory_space<vmem>>, vector<8x1xf32>
      %c0_31 = arith.constant 0 : index
      %c3 = arith.constant 3 : index
      %39 = vector.load %arg3[%c0_31, %c3] : memref<8x8xf32, #tpu.memory_space<vmem>>, vector<8x1xf32>
      %40 = vector.broadcast %38 : vector<8x1xf32> to vector<8x128xf32>
      %41 = arith.mulf %40, %37 : vector<8x128xf32>
      %c0_32 = arith.constant 0 : index
      %c0_33 = arith.constant 0 : index
      %42 = vector.load %arg5[%c0_32, %c0_33] : memref<8x128xf32, #tpu.memory_space<vmem>>, vector<8x128xf32>
      %43 = vector.broadcast %39 : vector<8x1xf32> to vector<8x128xf32>
      %44 = arith.mulf %43, %42 : vector<8x128xf32>
      %45 = arith.addf %41, %44 : vector<8x128xf32>
      %c0_34 = arith.constant 0 : index
      %c0_35 = arith.constant 0 : index
      %46 = vector.load %arg11[%c0_34, %c0_35] : memref<8x128xf32, #tpu.memory_space<vmem>>, vector<8x128xf32>
      tpu.vector_store %arg11[%c0_34, %c0_35], %45 {strides = array<i32>} : memref<8x128xf32, #tpu.memory_space<vmem>>, vector<8x128xf32>,
    } else {
    }
    return
  }
  func.func @transform_0(%arg0: i32) -> (i32, i32) {
    %c0_i32 = arith.constant 0 : i32
    %c0_i32_0 = arith.constant 0 : i32
    %c0_i32_1 = arith.constant 0 : i32
    return %c0_i32, %c0_i32_0 : i32, i32
  }
  func.func @transform_1(%arg0: i32) -> (i32, i32) {
    %c0_i32 = arith.constant 0 : i32
    %c0_i32_0 = arith.constant 0 : i32
    return %c0_i32, %arg0 : i32, i32
  }
  func.func @transform_2(%arg0: i32) -> (i32, i32) {
    %c0_i32 = arith.constant 0 : i32
    %c0_i32_0 = arith.constant 0 : i32
    %c0_i32_1 = arith.constant 0 : i32
    return %c0_i32, %c0_i32_0 : i32, i32
  }
  func.func @transform_3(%arg0: i32) -> (i32, i32) {
    %c0_i32 = arith.constant 0 : i32
    %c0_i32_0 = arith.constant 0 : i32
    return %c0_i32, %arg0 : i32, i32
  }
  func.func @transform_4(%arg0: i32) -> (i32, i32) {
    %c0_i32 = arith.constant 0 : i32
    %c0_i32_0 = arith.constant 0 : i32
    %c0_i32_1 = arith.constant 0 : i32
    return %c0_i32, %c0_i32_0 : i32, i32
  }
  func.func @transform_5(%arg0: i32) -> (i32, i32) {
    %c0_i32 = arith.constant 0 : i32
    %c0_i32_0 = arith.constant 0 : i32
    return %arg0, %c0_i32 : i32, i32
  }
  func.func @transform_6(%arg0: i32) -> (i32, i32) {
    %c0_i32 = arith.constant 0 : i32
    %c0_i32_0 = arith.constant 0 : i32
    %c0_i32_1 = arith.constant 0 : i32
    return %c0_i32, %c0_i32_0 : i32, i32
  }
  func.func @transform_7(%arg0: i32) -> (i32, i32) {
    %c0_i32 = arith.constant 0 : i32
    %c0_i32_0 = arith.constant 0 : i32
    %c0_i32_1 = arith.constant 0 : i32
    return %c0_i32, %c0_i32_0 : i32, i32
  }
  func.func @transform_8(%arg0: i32) -> (i32, i32) {
    %c0_i32 = arith.constant 0 : i32
    %c0_i32_0 = arith.constant 0 : i32
    %c0_i32_1 = arith.constant 0 : i32
    return %c0_i32, %c0_i32_0 : i32, i32
  }
  func.func @transform_9(%arg0: i32) -> (i32, i32) {
    %c0_i32 = arith.constant 0 : i32
    %c0_i32_0 = arith.constant 0 : i32
    return %c0_i32, %arg0 : i32, i32
  }
  func.func @transform_10(%arg0: i32) -> (i32, i32) {
    %c0_i32 = arith.constant 0 : i32
    %c0_i32_0 = arith.constant 0 : i32
    %c0_i32_1 = arith.constant 0 : i32
    return %c0_i32, %c0_i32_0 : i32, i32
  }
}

</mosaic_0001>

<bundles_post_ra>
// kernel: novel_module_forward.1
= control target key start
LH: loop header
LB: loop body
LE: loop exit
PB: predicated region body
PF: predicated region fallthrough
CT: control target
= control target key end

     0   :  { %s1462_s13 = smov 0   ;;  %s1464_s14 = smov 0   ;;  %s1615_s0 = inlined_call_operand.vmem [shape: bf16[8,16], index: 0, kind: input, shape index: {}]   ;;  %s1616_s1 = inlined_call_operand.vmem [shape: bf16[16,1024], index: 1, kind: input, shape index: {}]   ;;  %s1617_s2 = inlined_call_operand.vmem [shape: f32[8,8], index: 2, kind: input, shape index: {}]   ;;  %s1618_s3 = inlined_call_operand.vmem [shape: f32[8,1024], index: 3, kind: input, shape index: {}, may-alias: {3,9}]   ;;  %s1619_s4 = inlined_call_operand.vmem [shape: f32[8,128], index: 4, kind: input, shape index: {}, may-alias: {4,10}]   ;;  %s1620_s5 = inlined_call_operand.vmem [shape: bf16[1024,128], index: 5, kind: input, shape index: {}]   ;;  %s1621_s6 = inlined_call_operand.vmem [shape: f32[1,128], index: 6, kind: input, shape index: {}]   ;;  %s1622_s7 = inlined_call_operand.vmem [shape: bf16[128,128], index: 7, kind: input, shape index: {}]   ;;  %s1623_s8 = inlined_call_operand.vmem [shape: f32[1,128], index: 8, kind: input, shape index: {}]   ;;  %s1624_s9 = inlined_call_operand.vmem [shape: f32[8,1024], index: 9, kind: output, shape index: {0}, may-alias: {3,9}]   ;;  %s1625_s10 = inlined_call_operand.vmem [shape: f32[8,128], index: 10, kind: output, shape index: {1}, may-alias: {4,10}]  }
   0x1   :  { %s1466_s15 = smov 0  }
   0x2 LB: > { %s1478_s16 = sadd.s32 4294967295, %s1398_s15   ;;  %s1481_s17 = sadd.s32 1, %s1398_s15   ;;  %s1398_s15 = sphi %s1466_s15, %s1628_s15   ;;  %s1394_s14 = sphi %s1464_s14, %s1627_s14   ;;  %s1390_s13 = sphi %s1462_s13, %s1626_s13  }
   0x3   : > { %s46_s18 = ssub.s32 %s1398_s15, %s1481_s17  ;;  %s49_s19 = sadd.s32 1, %s1394_s14 }
   0x4   : > { %p47_p0 = scmp.eq.s32.totalorder %s46_s18, 0  ;;  %p56_p1 = scmp.ne.s32.totalorder %s1394_s14, %s1390_s13 }
   0x5   : > { %p57_p2 = scmp.eq.s32.totalorder %s1398_s15, 0  ;;  %p1157_p4 = scmp.ge.s32.totalorder %s1398_s15, 2 }
   0x6   : > { %s1490_s20 = scalar_select %p47_p0, %s1394_s14, %s49_s19  }
   0x7   : > { %p58_p3 = por %p57_p2, %p56_p1  ;;  %304 = sbr.rel (%p1157_p4) target bundleno = 21 (0x15), region = 40 }
   0xe   : > { %307 = sbr.rel (!%p58_p3) target bundleno = 21 (0x15), region = 44  ;;  %s309_s21 = sand.u32 (%p58_p3), 1, %s1394_s14  }
   0xf   : > { %s1221_s22 = sshll.u32 (%p58_p3), %s1398_s15, 4  ;;  %s1158_s23 = sshll.u32 (%p58_p3), %s309_s21, 5 }
  0x10   : > { %s314_s26 = scalar_lea.vmem (%p58_p3), %s1616_s1, %s1221_s22  ;;  %s311_s27 = scalar_lea.vmem (%p58_p3), [#allocation3], %s1158_s23 }
  0x11   : > { %v327_v0 = vld [vmem:[%s314_s26] sm:$0xff] (%p58_p3)  ;;  %v329_v1 = vld [vmem:[%s314_s26 + $0x8] sm:$0xff] (%p58_p3) }
  0x12   : > { %v331_v2 = vld [vmem:[%s314_s26 + $0x20] sm:$0xff] (%p58_p3)  ;;  %328 = vst [vmem:[%s311_s27] sm:$0xff] (%p58_p3), %v327_v0  ;;  %330 = vst [vmem:[%s311_s27 + $0x8] sm:$0xff] (%p58_p3), %v329_v1  ;;  %v333_v3 = vld [vmem:[%s314_s26 + $0x28] sm:$0xff] (%p58_p3) }
  0x13   : > { %332 = vst [vmem:[%s311_s27 + $0x10] sm:$0xff] (%p58_p3), %v331_v2  ;;  %334 = vst [vmem:[%s311_s27 + $0x18] sm:$0xff] (%p58_p3), %v333_v3 }
  0x15 PF: > { %p1161_p5 = scmp.ge.s32.totalorder %s1398_s15, 1  ;;  %p357_p6 = scmp.lt.s32.totalorder %s1398_s15, 3 }
  0x17   : > { %p358_p7 = pnand %p1161_p5, %p357_p6 }
  0x18   : > { %s364_s28 = sand.u32 (!%p358_p7), 1, %s1390_s13   ;;  %s1163_s29 = sshll.u32 (!%p358_p7), %s1478_s16, 2 }
  0x19   : > { %361 = sbr.rel (%p358_p7) target bundleno = 723 (0x2d3), region = 75  ;;  %s1162_s30 = sshll.u32 (!%p358_p7), %s364_s28, 5 }
  0x1a   : > { %p413_p8 = scmp.lt.s32.totalorder (!%p358_p7), %s1163_s29, 7  ;;  %s1165_s11 = sshll.u32 (!%p358_p7), %s1478_s16, 6 }
  0x1b   : > { %p419_p9 = scmp.lt.s32.totalorder (!%p358_p7), %s1165_s11, 127  ;;  %s366_s27 = scalar_lea.vmem (!%p358_p7), [#allocation3], %s1162_s30 }
  0x1c   : > { %p1169_p10 = scmp.ne.s32.totalorder (!%p358_p7), %s1478_s16, 0 }
  0x20   : > { %s1630_s29 = smov (!%p413_p8, %s1163_s29), 7  ;;  %s1632_s11 = smov (!%p419_p9, %s1165_s11), 127 }
  0x21   : > { %s1164_s12 = sshll.u32 %s1630_s29, 3  ;;  %s1166_s24 = sshll.u32 %s1632_s11, 2  ;;  %v1400_v4 = vmov (!%p1169_p10), 0.0  }
  0x22   : > { %s1506_s21 = scalar_lea.vmem %s1618_s3, %s1164_s12  ;;  %s1511_s23 = scalar_lea.vmem %s1624_s9, %s1164_s12  ;;  %435 = vst [vmem:[#allocation2] sm:$0xff] (!%p1169_p10), %v1400_v4 }
  0x23   : > { %s1516_s26 = scalar_lea.vmem %s1620_s5, %s1166_s24  ;;  %434 = sbr.rel (%p1169_p10) target bundleno = 42 (0x2a), region = 83 }
  0x2a PF: > { %v1328_v5 = vld [vmem:[%s366_s27 + $0x4] ss:$16 sps:$4 sm:$0xff]   ;;  %v1330_v6 = vld [vmem:[%s366_s27 + $0xc] ss:$16 sps:$4 sm:$0xff]   ;;  %v1401_v7 = vmov 0   ;;  %vm461_vm0 = vcmask 130048  }
  0x2b   : > { %497 = vmatprep.mubr.bf16.mxu0 %v1401_v7  ;;  %538 = vmatprep.mubr.bf16.mxu1 %v1401_v7  ;;  %v1332_v8 = vld [vmem:[%s366_s27] ss:$16 sps:$4 sm:$0xff]   ;;  %v1333_v9 = vld [vmem:[%s366_s27 + $0x8] ss:$16 sps:$4 sm:$0xff]   ;;  %v1402_v17 = vmov 1   ;;  %p1208_p11 = scmp.ne.s32.totalorder %s1478_s16, 1 }
  0x2c   : > { %465 = vmatprep.subr.bf16.mxu0 %v1328_v5  ;;  %v436_v10 = vld [vmem:[%s1615_s0] sm:$0xf]  ;;  %1326 = vset.pattern.permute.xlu0 %v1401_v7  ;;  %v1338_v16 = vld [vmem:[%s1516_s26 + $0x48] sm:$0xff]   ;;  %v1342_v21 = vld [vmem:[%s1516_s26 + $0x50] sm:$0xff]   ;;  %vm1404_vm1 = vmmov (!%p1208_p11), 0  }
  0x2d   : > { %506 = vmatprep.subr.bf16.mxu1 %v1330_v6  ;;  %v547_v11 = vld [vmem:[%s1617_s2] sm:$0xff]  ;;  %466 = vmatpush1.bf16.msra.mxu0 %v1332_v8  ;;  %v1339_v18 = vld [vmem:[%s1516_s26 + $0xc8] sm:$0xff]   ;;  %v1343_v22 = vld [vmem:[%s1516_s26 + $0xd0] sm:$0xff]  }
  0x2e   : > { %507 = vmatpush1.bf16.msra.mxu1 %v1333_v9  ;;  %v1334_v12 = vld [vmem:[%s1516_s26 + $0x40] sm:$0xff]   ;;  %550 = vperm.xlu0 %1326, %v547_v11   ;;  %v1340_v19 = vld [vmem:[%s1516_s26 + $0x8] sm:$0xff]   ;;  %v1344_v23 = vld [vmem:[%s1516_s26 + $0x10] sm:$0xff]  }
  0x2f   : > { %v1335_v13 = vld [vmem:[%s1516_s26 + $0xc0] sm:$0xff]   ;;  %1222 = vmatprep.subr.bf16.mxu0 %v1334_v12  ;;  %v1341_v20 = vld [vmem:[%s1516_s26 + $0x88] sm:$0xff]   ;;  %v1345_v24 = vld [vmem:[%s1516_s26 + $0x90] sm:$0xff]  }
  0x30   : > { %v1336_v14 = vld [vmem:[%s1516_s26] sm:$0xff]   ;;  %1174 = vmatmul.mubr.msk.bf16.vlgmr.msra.gmra.mrb[0].mxu0 %vm461_vm0, %v436_v10  ;;  %1244 = vmatprep.subr.bf16.mxu1 %v1335_v13  ;;  %v1346_v25 = vld [vmem:[%s1516_s26 + $0x58] sm:$0xff]   ;;  %v1354_v33 = vld [vmem:[%s1516_s26 + $0x68] sm:$0xff]  }
  0x31   : > { %1175 = vmatmul.mubr.msk.bf16.vlgmr.msra.gmra.mrb[0].mxu1 %vm461_vm0, %v436_v10  ;;  %v1337_v15 = vld [vmem:[%s1516_s26 + $0x80] sm:$0xff]   ;;  %1223 = vmatpush3.bf16.msra.mxu0 %v1336_v14  ;;  %v1347_v26 = vld [vmem:[%s1516_s26 + $0xd8] sm:$0xff]   ;;  %v1355_v34 = vld [vmem:[%s1516_s26 + $0xe8] sm:$0xff]  }
  0x32   : > { %1327 = vset.pattern.permute.xlu0 %v1402_v17  ;;  %1245 = vmatpush3.bf16.msra.mxu1 %v1337_v15  ;;  %v1348_v27 = vld [vmem:[%s1516_s26 + $0x18] sm:$0xff]   ;;  %v1350_v29 = vld [vmem:[%s1516_s26 + $0x60] sm:$0xff]   ;;  %v1356_v35 = vld [vmem:[%s1516_s26 + $0x28] sm:$0xff]  }
  0x33   : > { %562 = vperm.xlu0 %1327, %v547_v11   ;;  %1224 = vmatprep.subr.bf16.mxu0 %v1338_v16  ;;  %v1349_v28 = vld [vmem:[%s1516_s26 + $0x98] sm:$0xff]   ;;  %v1351_v30 = vld [vmem:[%s1516_s26 + $0xe0] sm:$0xff]   ;;  %v1357_v36 = vld [vmem:[%s1516_s26 + $0xa8] sm:$0xff]  }
  0x34   : > { %1246 = vmatprep.subr.bf16.mxu1 %v1339_v18  ;;  %v1352_v31 = vld [vmem:[%s1516_s26 + $0x20] sm:$0xff]   ;;  %v1358_v37 = vld [vmem:[%s1516_s26 + $0x70] sm:$0xff]   ;;  %v1362_v41 = vld [vmem:[%s1516_s26 + $0x78] sm:$0xff]  }
  0x35   : > { %1225 = vmatpush3.bf16.msra.mxu0 %v1340_v19  ;;  %v1353_v32 = vld [vmem:[%s1516_s26 + $0xa0] sm:$0xff]   ;;  %v1359_v38 = vld [vmem:[%s1516_s26 + $0xf0] sm:$0xff]   ;;  %v1363_v42 = vld [vmem:[%s1516_s26 + $0xf8] sm:$0xff]  }
  0x36   : > { %1247 = vmatpush3.bf16.msra.mxu1 %v1341_v20  ;;  %1226 = vmatprep.subr.bf16.mxu0 %v1342_v21  ;;  %v1360_v39 = vld [vmem:[%s1516_s26 + $0x30] sm:$0xff]   ;;  %v1364_v43 = vld [vmem:[%s1516_s26 + $0x38] sm:$0xff]   ;;  %v557_v46 = vld [vmem:[%s1506_s21] sm:$0xff] }
  0x37   : > { %1248 = vmatprep.subr.bf16.mxu1 %v1343_v22  ;;  %v1361_v40 = vld [vmem:[%s1516_s26 + $0xb0] sm:$0xff]   ;;  %v1365_v44 = vld [vmem:[%s1516_s26 + $0xb8] sm:$0xff]   ;;  %v558_v49 = vld [vmem:[%s1506_s21 + $0x8] sm:$0xff] }
  0x38   : > { %v559_v47 = vld [vmem:[%s1506_s21 + $0x10] sm:$0xff]  ;;  %v560_v50 = vld [vmem:[%s1506_s21 + $0x18] sm:$0xff]  ;;  %v577_v19 = vld [vmem:[#allocation2] sm:$0xff] }
  0x39   : > { %1227 = vmatpush3.bf16.msra.mxu0 %v1344_v23 }
  0x3a   : > { %1249 = vmatpush3.bf16.msra.mxu1 %v1345_v24  ;;  %1228 = vmatprep.subr.bf16.mxu0 %v1346_v25  ;;  %v1368_v24 = vld [vmem:[%s1622_s7] sm:$0xff] (!%p1208_p11)   ;;  %v1403_v25 = vmov (!%p1208_p11), 0.0  }
  0x3b   : > { %1250 = vmatprep.subr.bf16.mxu1 %v1347_v26  ;;  %v1369_v26 = vld [vmem:[%s1622_s7 + $0x8] sm:$0xff] (!%p1208_p11)  }
  0x3d   : > { %1229 = vmatpush3.bf16.msra.mxu0 %v1348_v27  ;;  %v1405_v27 = vmov (!%p1208_p11), 2  }
  0x3e   : > { %1251 = vmatpush3.bf16.msra.mxu1 %v1349_v28  ;;  %1230 = vmatprep.subr.bf16.mxu0 %v1350_v29  ;;  %v1370_v28 = vld [vmem:[%s1622_s7 + $0x10] sm:$0xff] (!%p1208_p11)   ;;  %v1047_v29 = vld [vmem:[%s1617_s2] sm:$0xff] (!%p1208_p11) }
  0x3f   : > { %1252 = vmatprep.subr.bf16.mxu1 %v1351_v30  ;;  %1366 = vset.pattern.permute.xlu0 (!%p1208_p11), %v1405_v27  ;;  %v1371_v30 = vld [vmem:[%s1622_s7 + $0x18] sm:$0xff] (!%p1208_p11)  }
  0x40   : > { %1050 = vperm.xlu0 (!%p1208_p11), %1366, %v1047_v29  }
  0x41   : > { %1231 = vmatpush3.bf16.msra.mxu0 %v1352_v31  ;;  %v1406_v31 = vmov (!%p1208_p11), 3  }
  0x42   : > { %1253 = vmatpush3.bf16.msra.mxu1 %v1353_v32  ;;  %1232 = vmatprep.subr.bf16.mxu0 %v1354_v33  ;;  %v1372_v32 = vld [vmem:[%s1622_s7 + $0x20] sm:$0xff] (!%p1208_p11)   ;;  %v1373_v33 = vld [vmem:[%s1622_s7 + $0x28] sm:$0xff] (!%p1208_p11)  }
  0x43   : > { %1254 = vmatprep.subr.bf16.mxu1 %v1355_v34 }
  0x44   : > { %1367 = vset.pattern.permute.xlu0 (!%p1208_p11), %v1406_v31 }
  0x45   : > { %1233 = vmatpush3.bf16.msra.mxu0 %v1356_v35  ;;  %1056 = vperm.xlu0 (!%p1208_p11), %1367, %v1047_v29   ;;  %v1209_v35 = vld [vmem:[%s1621_s6] ss:$0 sm:$0xff] (!%p1208_p11) }
  0x46   : > { %1255 = vmatpush3.bf16.msra.mxu1 %v1357_v36  ;;  %1234 = vmatprep.subr.bf16.mxu0 %v1358_v37  ;;  %v1374_v37 = vld [vmem:[%s1622_s7 + $0x30] sm:$0xff] (!%p1208_p11)  }
  0x47   : > { %1256 = vmatprep.subr.bf16.mxu1 %v1359_v38 }
  0x49   : > { %1235 = vmatpush3.bf16.msra.mxu0 %v1360_v39  ;;  %v1375_v39 = vld [vmem:[%s1622_s7 + $0x38] sm:$0xff] (!%p1208_p11)  }
  0x4a   : > { %1257 = vmatpush3.bf16.msra.mxu1 %v1361_v40  ;;  %1236 = vmatprep.subr.bf16.mxu0 %v1362_v41 }
  0x4b   : > { %1258 = vmatprep.subr.bf16.mxu1 %v1363_v42  ;;  %v1210_v42 = vld [vmem:[%s1623_s8] ss:$0 sm:$0xff] (!%p1208_p11) }
  0x4d   : > { %1237 = vmatpush3.bf16.msra.mxu0 %v1364_v43 }
  0x4e   : > { %1259 = vmatpush3.bf16.msra.mxu1 %v1365_v44  ;;  %1275 = vmatprep.subr.bf16.mxu0 (!%p1208_p11), %v1403_v25  ;;  %v1054_v44 = vld [vmem:[%s1619_s4] sm:$0xff] (!%p1208_p11) }
  0xad   : > { %v551_v45 = vpop.permute.xlu0 %550 }
  0xb2   : > { %v563_v48 = vpop.permute.xlu0 %562 }
  0xb3   : > { %v565_v51 = vmul.f32 %v563_v48, %v557_v46  ;;  %v567_v52 = vmul.f32 %v563_v48, %v559_v47  ;;  %v566_v53 = vmul.f32 %v563_v48, %v558_v49  ;;  %v568_v54 = vmul.f32 %v563_v48, %v560_v50 }
  0xbf   : > { %v1051_v41 = vpop.permute.xlu0 (!%p1208_p11), %1050 }
 0x103   : > { %v499_v55 = vpop.f32.mrb[0].mxu0 }
 0x104   : > { %v540_v56 = vpop.f32.mrb[0].mxu1  ;;  %v553_v57 = vmul.f32 %v551_v45, %v499_v55  ;;  %v501_v59 = vpop.f32.mrb[1].mxu0 }
 0x105   : > { %v555_v58 = vmul.f32 %v551_v45, %v540_v56  ;;  %v542_v60 = vpop.f32.mrb[1].mxu1  ;;  %v554_v61 = vmul.f32 %v551_v45, %v501_v59  ;;  %v503_v63 = vpop.f32.mrb[2].mxu0 }
 0x106   : > { %v556_v62 = vmul.f32 %v551_v45, %v542_v60  ;;  %v544_v0 = vpop.f32.mrb[2].mxu1  ;;  %v569_v1 = vadd.f32 %v565_v51, %v553_v57  ;;  %v504_v3 = vpop.f32.mrb[3].mxu0 }
 0x107   : > { %v571_v2 = vadd.f32 %v567_v52, %v555_v58  ;;  %v545_v4 = vpop.f32.mrb[3].mxu1  ;;  %v570_v5 = vadd.f32 %v566_v53, %v554_v61  ;;  %v1057_v45 = vpop.permute.xlu0 (!%p1208_p11), %1056 }
 0x108   : > { %v572_v6 = vadd.f32 %v568_v54, %v556_v62  ;;  %573 = vst [vmem:[%s1511_s23] sm:$0xff] %v569_v1  ;;  %v578_v9 = vpack.c.bf16 %v569_v1, %v569_v1  ;;  %v1059_v51 = vmul.f32 (!%p1208_p11), %v1057_v45, %v1054_v44 }
 0x109   : > { %574 = vst [vmem:[%s1511_s23 + $0x8] sm:$0xff] %v570_v5  ;;  %v579_v7 = vpack.c.bf16 %v570_v5, %v570_v5  ;;  %v580_v10 = vpack.c.bf16 %v571_v2, %v571_v2  ;;  %575 = vst [vmem:[%s1511_s23 + $0x10] sm:$0xff] %v571_v2 }
 0x10a   : > { %v581_v8 = vpack.c.bf16 %v572_v6, %v572_v6  ;;  %576 = vst [vmem:[%s1511_s23 + $0x18] sm:$0xff] %v572_v6 }
 0x10b   : > { %870 = vmatprep.mubr.bf16.mxu0 %v579_v7 }
 0x10c   : > { %910 = vmatprep.mubr.bf16.mxu1 %v581_v8  ;;  %871 = vmatmul.mubr.bf16.vlgmr.msra.gmra.mrb[4].mxu0 %v578_v9 }
 0x10d   : > { %911 = vmatmul.mubr.bf16.vlgmr.msra.gmra.mrb[4].mxu1 %v580_v10  ;;  %1276 = vmatpush3.bf16.msra.mxu0 (!%p1208_p11), %v1368_v24 }
 0x10e   : > { %1291 = vmatprep.mubr.msk.bf16.mxu0 (!%p1208_p11), %vm1404_vm1, %v1403_v25  ;;  %1277 = vmatprep.subr.bf16.mxu0 (!%p1208_p11), %v1403_v25 }
 0x111   : > { %1278 = vmatpush3.bf16.msra.mxu0 (!%p1208_p11), %v1369_v26 }
 0x112   : > { %1279 = vmatprep.subr.bf16.mxu0 (!%p1208_p11), %v1403_v25 }
 0x115   : > { %1280 = vmatpush3.bf16.msra.mxu0 (!%p1208_p11), %v1370_v28 }
 0x116   : > { %1281 = vmatprep.subr.bf16.mxu0 (!%p1208_p11), %v1403_v25 }
 0x119   : > { %1282 = vmatpush3.bf16.msra.mxu0 (!%p1208_p11), %v1371_v30 }
 0x11a   : > { %1283 = vmatprep.subr.bf16.mxu0 (!%p1208_p11), %v1403_v25 }
 0x11d   : > { %1284 = vmatpush3.bf16.msra.mxu0 (!%p1208_p11), %v1372_v32 }
 0x11e   : > { %1285 = vmatprep.subr.bf16.mxu0 (!%p1208_p11), %v1403_v25 }
 0x121   : > { %1286 = vmatpush3.bf16.msra.mxu0 (!%p1208_p11), %v1373_v33 }
 0x122   : > { %1287 = vmatprep.subr.bf16.mxu0 (!%p1208_p11), %v1403_v25 }
 0x125   : > { %1288 = vmatpush3.bf16.msra.mxu0 (!%p1208_p11), %v1374_v37 }
 0x126   : > { %1289 = vmatprep.subr.bf16.mxu0 (!%p1208_p11), %v1403_v25 }
 0x129   : > { %1290 = vmatpush3.bf16.msra.mxu0 (!%p1208_p11), %v1375_v39 }
 0x1df   : > { %v1238_v11 = vpop.f32.mrb[4].mxu0 }
 0x1e0   : > { %v1260_v12 = vpop.f32.mrb[4].mxu1  ;;  %v1239_v13 = vpop.f32.mrb[5].mxu0 }
 0x1e1   : > { %v1261_v14 = vpop.f32.mrb[5].mxu1  ;;  %v1240_v15 = vadd.f32 %v1239_v13, %v1238_v11  ;;  %v1241_v17 = vpop.f32.mrb[6].mxu0 }
 0x1e2   : > { %v1262_v16 = vadd.f32 %v1261_v14, %v1260_v12  ;;  %v1263_v18 = vpop.f32.mrb[6].mxu1  ;;  %v1242_v20 = vpop.f32.mrb[7].mxu0  ;;  %923 = sbr.rel (%p1208_p11) target bundleno = 723 (0x2d3), region = 87 }
 0x1e3   : > { %v1264_v21 = vpop.f32.mrb[7].mxu1 }
 0x1e4   : > { %v913_v22 = vadd.f32 %v1262_v16, %v1240_v15 }
 0x1e6   : > { %v918_v23 = vadd.f32 %v913_v22, %v577_v19 }
 0x1e8   : > { %919 = vst [vmem:[#allocation2] sm:$0xff] %v918_v23 }
 0x1ef   : > { %v924_v34 = vld [vmem:[#allocation2] sm:$0xff] }
 0x1f0   : > { %v932_v36 = vadd.f32 %v1209_v35, %v924_v34 }
 0x1f2   : > { %v933_v38 = vmax.f32 %v932_v36, 0.0 }
 0x1f4   : > { %v934_v40 = vpack.c.bf16 %v933_v38, %v933_v38 }
 0x1f6   : > { %1292 = vmatmul.mubr.bf16.vlgmr.msra.gmra.mrb[0].mxu0 %v934_v40 }
 0x2c9   : > { %v1040_v43 = vpop.f32.mrb[0].mxu0 }
 0x2ca   : > { %v1041_v46 = vadd.f32 %v1210_v42, %v1040_v43  ;;  %v1293_v47 = vpop.f32.mrb[1].mxu0 }
 0x2cb   : > { %v1043_v48 = vpop.f32.mrb[2].mxu0 }
 0x2cc   : > { %v1046_v49 = vmax.f32 %v1041_v46, 0.0  ;;  %v1294_v50 = vpop.f32.mrb[3].mxu0 }
 0x2ce   : > { %v1053_v52 = vmul.f32 %v1051_v41, %v1046_v49 }
 0x2d0   : > { %v1060_v53 = vadd.f32 %v1059_v51, %v1053_v52 }
 0x2d2   : > { %1061 = vst [vmem:[%s1625_s10] sm:$0xff] %v1060_v53 }
 0x2d3 PF: > { %p18_p12 = scmp.ge.s32.totalorder %s1481_s17, 4   ;;  %s1626_s13 = smov %s1394_s14 }
 0x2d4   : > { %s1627_s14 = smov %s1490_s20  ;;  %s1628_s15 = smov %s1481_s17 }
 0x2d5   :  { %20 = sbr.rel (!%p18_p12) target bundleno = 2 (0x2), region = 136 }

</bundles_post_ra>
